<compile_context>
chip_gen: v5e
topology: v5e:2x2
jax: 0.10.0
libtpu: 0.0.40
codegen_flags: <defaults>
</compile_context>

<pallas_src>
import functools

import jax
import jax.numpy as jnp
from jax.experimental import pallas as pl
from jax.experimental.pallas import tpu as pltpu

_SUBLANE = 8
_LANE = 128


# ----------------------------------------------------------------------------
# Fused kernel: num_layers tanh-RNN layers + Linear head, all values in vregs.
# ----------------------------------------------------------------------------
def _fused_stock_kernel(num_layers, L, Np, H, Op, *refs):
    x_ref = refs[0]                                   # (L*Np, I)
    layer_refs = refs[1:1 + 3 * num_layers]           # (wih_t, whh_t, b) per layer
    fc_w_ref = refs[1 + 3 * num_layers]               # (H, Op)  lane-padded
    fc_b_ref = refs[2 + 3 * num_layers]               # (1, Op)
    out_ref = refs[3 + 3 * num_layers]                # (L*Np, Op)

    act = x_ref[...].astype(jnp.float32)              # (L*Np, in) current layer input

    for l in range(num_layers):
        wih = layer_refs[3 * l][...].astype(jnp.float32)       # (in, H)
        whh = layer_refs[3 * l + 1][...].astype(jnp.float32)   # (H, H)
        b = layer_refs[3 * l + 2][...]                          # (1, H)

        # Hoisted input projection for ALL timesteps: one MXU matmul, bias
        # folded in once (not re-broadcast inside the time loop).
        proj = jnp.dot(act, wih, preferred_element_type=jnp.float32) + b  # (L*Np, H)

        # Fully unrolled recurrence; only h @ Whh + tanh on the serial path.
        # PyTorch default h0 = zeros.
        h = jnp.zeros((Np, H), jnp.float32)
        hs = []
        for t in range(L):
            h = jnp.tanh(
                proj[t * Np:(t + 1) * Np, :]
                + jnp.dot(h, whh, preferred_element_type=jnp.float32))
            hs.append(h)

        # Assemble the layer output once (sublane-aligned (Np, H) chunks).
        act = jnp.concatenate(hs, axis=0)              # (L*Np, H)

    # Linear head over all (L*Np) rows at once; lane-dense (Op multiple of 128).
    y = jnp.dot(act, fc_w_ref[...].astype(jnp.float32),
                preferred_element_type=jnp.float32) + fc_b_ref[...]
    out_ref[...] = y.astype(out_ref.dtype)


def stock_forward_pallas(params, x):
    """x: (L, N, input_size) -> (L, N, output_size), fused RNN stack + FC."""
    L, N, I = x.shape
    num_layers = len(params["rnn"])
    H = params["rnn"][0]["w_hh_t"].shape[0]
    O = params["fc"]["w_t"].shape[1]

    # Sublane-pad the batch (fills the MXU LHS tile; keeps every in-kernel
    # slice/concat 8-aligned).  Padded rows are zeros and are dropped below.
    Np = ((N + _SUBLANE - 1) // _SUBLANE) * _SUBLANE
    # Lane-pad the output width so the final store is an unmasked vst.
    Op = ((O + _LANE - 1) // _LANE) * _LANE

    x_p = x if Np == N else jnp.pad(x, ((0, 0), (0, Np - N), (0, 0)))
    x2d = x_p.reshape(L * Np, I)                       # 2D, done outside the kernel

    fc_w = params["fc"]["w_t"]                         # (H, O)
    fc_b = params["fc"]["b"]                           # (1, O)
    if Op != O:
        fc_w = jnp.pad(fc_w, ((0, 0), (0, Op - O)))
        fc_b = jnp.pad(fc_b, ((0, 0), (0, Op - O)))

    inputs = [x2d]
    in_specs = [pl.BlockSpec((L * Np, I), lambda: (0, 0))]
    for lp in params["rnn"]:
        inputs += [lp["w_ih_t"], lp["w_hh_t"], lp["b"]]
        in_specs += [
            pl.BlockSpec(lp["w_ih_t"].shape, lambda: (0, 0)),
            pl.BlockSpec((H, H), lambda: (0, 0)),
            pl.BlockSpec((1, H), lambda: (0, 0)),
        ]
    inputs += [fc_w, fc_b]
    in_specs += [
        pl.BlockSpec((H, Op), lambda: (0, 0)),
        pl.BlockSpec((1, Op), lambda: (0, 0)),
    ]

    kernel = functools.partial(_fused_stock_kernel, num_layers, L, Np, H, Op)

    out2d = pl.pallas_call(
        kernel,
        out_shape=jax.ShapeDtypeStruct((L * Np, Op), x.dtype),
        in_specs=in_specs,
        out_specs=pl.BlockSpec((L * Np, Op), lambda: (0, 0)),
    )(*inputs)

    # Undo the padding outside the kernel (layout plumbing stays in XLA).
    return out2d.reshape(L, Np, Op)[:, :N, :O]


# ----------------------------------------------------------------------------
# Parameter init (mirrors PyTorch nn.RNN + xavier_uniform_ fc weight)
# ----------------------------------------------------------------------------
def init_params(key, input_size, hidden_size, output_size, num_layers):
    params = {"rnn": [], "fc": {}}
    k = 1.0 / jnp.sqrt(jnp.float32(hidden_size))
    for layer in range(num_layers):
        in_sz = input_size if layer == 0 else hidden_size
        key, k1, k2, k3, k4 = jax.random.split(key, 5)
        w_ih = jax.random.uniform(k1, (hidden_size, in_sz), jnp.float32, -k, k)
        w_hh = jax.random.uniform(k2, (hidden_size, hidden_size), jnp.float32, -k, k)
        b_ih = jax.random.uniform(k3, (hidden_size,), jnp.float32, -k, k)
        b_hh = jax.random.uniform(k4, (hidden_size,), jnp.float32, -k, k)
        params["rnn"].append(
            {"w_ih_t": w_ih.T,                        # (in, H)
             "w_hh_t": w_hh.T,                        # (H, H)
             "b": (b_ih + b_hh)[None, :]})            # (1, H)
    key, k5, k6 = jax.random.split(key, 3)
    bound = jnp.sqrt(6.0 / jnp.float32(hidden_size + output_size))
    fc_w = jax.random.uniform(k5, (output_size, hidden_size), jnp.float32,
                              -bound, bound)
    fc_b = jax.random.uniform(k6, (output_size,), jnp.float32, -k, k)
    params["fc"] = {"w_t": fc_w.T, "b": fc_b[None, :]}   # (H, O), (1, O)
    return params


stock_forward = jax.jit(stock_forward_pallas)


# Pure-JAX reference for verification.
def stock_forward_ref(params, x):
    h = x
    for lp in params["rnn"]:
        L, N, _ = h.shape
        H = lp["w_hh_t"].shape[0]
        ht = jnp.zeros((N, H), jnp.float32)
        outs = []
        for t in range(L):
            ht = jnp.tanh(h[t] @ lp["w_ih_t"] + ht @ lp["w_hh_t"] + lp["b"])
            outs.append(ht)
        h = jnp.stack(outs, axis=0)
    return h @ params["fc"]["w_t"] + params["fc"]["b"]


if __name__ == "__main__":
    # seq=8, batch=2, input=4, hidden=32, output=8, num_layers=2.
    L, N, INPUT, HIDDEN, OUTPUT, NUM_LAYERS = 8, 2, 4, 32, 8, 2

    key = jax.random.PRNGKey(0)
    kx, kp = jax.random.split(key)
    x = jax.random.normal(kx, (L, N, INPUT), jnp.float32)
    params = init_params(kp, INPUT, HIDDEN, OUTPUT, NUM_LAYERS)

    out = stock_forward(params, x)
    out = jax.block_until_ready(out)

    ref = stock_forward_ref(params, x)
    assert out.shape == (L, N, OUTPUT)
    assert jnp.allclose(out, ref, rtol=1e-5, atol=1e-5), "mismatch vs reference"

    print("KERNEL_OK")
</pallas_src>

<mosaic_0001>
module attributes {stable_mosaic.version = 11 : i64} {
  func.func @_fused_stock_kernel(%arg0: memref<64x4xf32, #tpu.memory_space<vmem>>, %arg1: memref<4x32xf32, #tpu.memory_space<vmem>>, %arg2: memref<32x32xf32, #tpu.memory_space<vmem>>, %arg3: memref<1x32xf32, #tpu.memory_space<vmem>>, %arg4: memref<32x32xf32, #tpu.memory_space<vmem>>, %arg5: memref<32x32xf32, #tpu.memory_space<vmem>>, %arg6: memref<1x32xf32, #tpu.memory_space<vmem>>, %arg7: memref<32x128xf32, #tpu.memory_space<vmem>>, %arg8: memref<1x128xf32, #tpu.memory_space<vmem>>, %arg9: memref<64x128xf32, #tpu.memory_space<vmem>>) attributes {dimension_semantics = [], scalar_prefetch = 0 : i64, scratch_operands = 0 : i64, tpu.core_type = #tpu.core_type<tc>} {
    %c0 = arith.constant 0 : index
    %c0_0 = arith.constant 0 : index
    %0 = vector.load %arg0[%c0, %c0_0] : memref<64x4xf32, #tpu.memory_space<vmem>>, vector<64x4xf32>
    %c0_1 = arith.constant 0 : index
    %c0_2 = arith.constant 0 : index
    %1 = vector.load %arg1[%c0_1, %c0_2] : memref<4x32xf32, #tpu.memory_space<vmem>>, vector<4x32xf32>
    %c0_3 = arith.constant 0 : index
    %c0_4 = arith.constant 0 : index
    %2 = vector.load %arg2[%c0_3, %c0_4] : memref<32x32xf32, #tpu.memory_space<vmem>>, vector<32x32xf32>
    %c0_5 = arith.constant 0 : index
    %c0_6 = arith.constant 0 : index
    %3 = vector.load %arg3[%c0_5, %c0_6] : memref<1x32xf32, #tpu.memory_space<vmem>>, vector<1x32xf32>
    %cst = arith.constant dense<0.000000e+00> : vector<64x32xf32>
    %4 = tpu.matmul %0, %1, %cst {dimension_numbers = #tpu.dot_dimension_numbers<[1], [0], [0], [1], [0, 0, 1, 1], [], []>} : vector<64x4xf32>, vector<4x32xf32>, vector<64x32xf32> -> vector<64x32xf32>
    %5 = vector.broadcast %3 : vector<1x32xf32> to vector<64x32xf32>
    %6 = arith.addf %4, %5 : vector<64x32xf32>
    %cst_7 = arith.constant 0.000000e+00 : f32
    %7 = vector.broadcast %cst_7 : f32 to vector<8x32xf32>
    %8 = vector.extract_strided_slice %6 {offsets = [0, 0], sizes = [8, 32], strides = [1, 1]} : vector<64x32xf32> to vector<8x32xf32>
    %cst_8 = arith.constant dense<0.000000e+00> : vector<8x32xf32>
    %9 = tpu.matmul %7, %2, %cst_8 {dimension_numbers = #tpu.dot_dimension_numbers<[1], [0], [0], [1], [0, 0, 1, 1], [], []>} : vector<8x32xf32>, vector<32x32xf32>, vector<8x32xf32> -> vector<8x32xf32>
    %10 = arith.addf %8, %9 : vector<8x32xf32>
    %11 = math.tanh %10 : vector<8x32xf32>
    %12 = vector.extract_strided_slice %6 {offsets = [8, 0], sizes = [8, 32], strides = [1, 1]} : vector<64x32xf32> to vector<8x32xf32>
    %cst_9 = arith.constant dense<0.000000e+00> : vector<8x32xf32>
    %13 = tpu.matmul %11, %2, %cst_9 {dimension_numbers = #tpu.dot_dimension_numbers<[1], [0], [0], [1], [0, 0, 1, 1], [], []>} : vector<8x32xf32>, vector<32x32xf32>, vector<8x32xf32> -> vector<8x32xf32>
    %14 = arith.addf %12, %13 : vector<8x32xf32>
    %15 = math.tanh %14 : vector<8x32xf32>
    %16 = vector.extract_strided_slice %6 {offsets = [16, 0], sizes = [8, 32], strides = [1, 1]} : vector<64x32xf32> to vector<8x32xf32>
    %cst_10 = arith.constant dense<0.000000e+00> : vector<8x32xf32>
    %17 = tpu.matmul %15, %2, %cst_10 {dimension_numbers = #tpu.dot_dimension_numbers<[1], [0], [0], [1], [0, 0, 1, 1], [], []>} : vector<8x32xf32>, vector<32x32xf32>, vector<8x32xf32> -> vector<8x32xf32>
    %18 = arith.addf %16, %17 : vector<8x32xf32>
    %19 = math.tanh %18 : vector<8x32xf32>
    %20 = vector.extract_strided_slice %6 {offsets = [24, 0], sizes = [8, 32], strides = [1, 1]} : vector<64x32xf32> to vector<8x32xf32>
    %cst_11 = arith.constant dense<0.000000e+00> : vector<8x32xf32>
    %21 = tpu.matmul %19, %2, %cst_11 {dimension_numbers = #tpu.dot_dimension_numbers<[1], [0], [0], [1], [0, 0, 1, 1], [], []>} : vector<8x32xf32>, vector<32x32xf32>, vector<8x32xf32> -> vector<8x32xf32>
    %22 = arith.addf %20, %21 : vector<8x32xf32>
    %23 = math.tanh %22 : vector<8x32xf32>
    %24 = vector.extract_strided_slice %6 {offsets = [32, 0], sizes = [8, 32], strides = [1, 1]} : vector<64x32xf32> to vector<8x32xf32>
    %cst_12 = arith.constant dense<0.000000e+00> : vector<8x32xf32>
    %25 = tpu.matmul %23, %2, %cst_12 {dimension_numbers = #tpu.dot_dimension_numbers<[1], [0], [0], [1], [0, 0, 1, 1], [], []>} : vector<8x32xf32>, vector<32x32xf32>, vector<8x32xf32> -> vector<8x32xf32>
    %26 = arith.addf %24, %25 : vector<8x32xf32>
    %27 = math.tanh %26 : vector<8x32xf32>
    %28 = vector.extract_strided_slice %6 {offsets = [40, 0], sizes = [8, 32], strides = [1, 1]} : vector<64x32xf32> to vector<8x32xf32>
    %cst_13 = arith.constant dense<0.000000e+00> : vector<8x32xf32>
    %29 = tpu.matmul %27, %2, %cst_13 {dimension_numbers = #tpu.dot_dimension_numbers<[1], [0], [0], [1], [0, 0, 1, 1], [], []>} : vector<8x32xf32>, vector<32x32xf32>, vector<8x32xf32> -> vector<8x32xf32>
    %30 = arith.addf %28, %29 : vector<8x32xf32>
    %31 = math.tanh %30 : vector<8x32xf32>
    %32 = vector.extract_strided_slice %6 {offsets = [48, 0], sizes = [8, 32], strides = [1, 1]} : vector<64x32xf32> to vector<8x32xf32>
    %cst_14 = arith.constant dense<0.000000e+00> : vector<8x32xf32>
    %33 = tpu.matmul %31, %2, %cst_14 {dimension_numbers = #tpu.dot_dimension_numbers<[1], [0], [0], [1], [0, 0, 1, 1], [], []>} : vector<8x32xf32>, vector<32x32xf32>, vector<8x32xf32> -> vector<8x32xf32>
    %34 = arith.addf %32, %33 : vector<8x32xf32>
    %35 = math.tanh %34 : vector<8x32xf32>
    %36 = vector.extract_strided_slice %6 {offsets = [56, 0], sizes = [8, 32], strides = [1, 1]} : vector<64x32xf32> to vector<8x32xf32>
    %cst_15 = arith.constant dense<0.000000e+00> : vector<8x32xf32>
    %37 = tpu.matmul %35, %2, %cst_15 {dimension_numbers = #tpu.dot_dimension_numbers<[1], [0], [0], [1], [0, 0, 1, 1], [], []>} : vector<8x32xf32>, vector<32x32xf32>, vector<8x32xf32> -> vector<8x32xf32>
    %38 = arith.addf %36, %37 : vector<8x32xf32>
    %39 = math.tanh %38 : vector<8x32xf32>
    %40 = tpu.concatenate %11, %15, %19, %23, %27, %31, %35, %39 in 0 : vector<8x32xf32>, vector<8x32xf32>, vector<8x32xf32>, vector<8x32xf32>, vector<8x32xf32>, vector<8x32xf32>, vector<8x32xf32>, vector<8x32xf32> -> vector<64x32xf32>
    %c0_16 = arith.constant 0 : index
    %c0_17 = arith.constant 0 : index
    %41 = vector.load %arg4[%c0_16, %c0_17] : memref<32x32xf32, #tpu.memory_space<vmem>>, vector<32x32xf32>
    %c0_18 = arith.constant 0 : index
    %c0_19 = arith.constant 0 : index
    %42 = vector.load %arg5[%c0_18, %c0_19] : memref<32x32xf32, #tpu.memory_space<vmem>>, vector<32x32xf32>
    %c0_20 = arith.constant 0 : index
    %c0_21 = arith.constant 0 : index
    %43 = vector.load %arg6[%c0_20, %c0_21] : memref<1x32xf32, #tpu.memory_space<vmem>>, vector<1x32xf32>
    %cst_22 = arith.constant dense<0.000000e+00> : vector<64x32xf32>
    %44 = tpu.matmul %40, %41, %cst_22 {dimension_numbers = #tpu.dot_dimension_numbers<[1], [0], [0], [1], [0, 0, 1, 1], [], []>} : vector<64x32xf32>, vector<32x32xf32>, vector<64x32xf32> -> vector<64x32xf32>
    %45 = vector.broadcast %43 : vector<1x32xf32> to vector<64x32xf32>
    %46 = arith.addf %44, %45 : vector<64x32xf32>
    %cst_23 = arith.constant 0.000000e+00 : f32
    %47 = vector.broadcast %cst_23 : f32 to vector<8x32xf32>
    %48 = vector.extract_strided_slice %46 {offsets = [0, 0], sizes = [8, 32], strides = [1, 1]} : vector<64x32xf32> to vector<8x32xf32>
    %cst_24 = arith.constant dense<0.000000e+00> : vector<8x32xf32>
    %49 = tpu.matmul %47, %42, %cst_24 {dimension_numbers = #tpu.dot_dimension_numbers<[1], [0], [0], [1], [0, 0, 1, 1], [], []>} : vector<8x32xf32>, vector<32x32xf32>, vector<8x32xf32> -> vector<8x32xf32>
    %50 = arith.addf %48, %49 : vector<8x32xf32>
    %51 = math.tanh %50 : vector<8x32xf32>
    %52 = vector.extract_strided_slice %46 {offsets = [8, 0], sizes = [8, 32], strides = [1, 1]} : vector<64x32xf32> to vector<8x32xf32>
    %cst_25 = arith.constant dense<0.000000e+00> : vector<8x32xf32>
    %53 = tpu.matmul %51, %42, %cst_25 {dimension_numbers = #tpu.dot_dimension_numbers<[1], [0], [0], [1], [0, 0, 1, 1], [], []>} : vector<8x32xf32>, vector<32x32xf32>, vector<8x32xf32> -> vector<8x32xf32>
    %54 = arith.addf %52, %53 : vector<8x32xf32>
    %55 = math.tanh %54 : vector<8x32xf32>
    %56 = vector.extract_strided_slice %46 {offsets = [16, 0], sizes = [8, 32], strides = [1, 1]} : vector<64x32xf32> to vector<8x32xf32>
    %cst_26 = arith.constant dense<0.000000e+00> : vector<8x32xf32>
    %57 = tpu.matmul %55, %42, %cst_26 {dimension_numbers = #tpu.dot_dimension_numbers<[1], [0], [0], [1], [0, 0, 1, 1], [], []>} : vector<8x32xf32>, vector<32x32xf32>, vector<8x32xf32> -> vector<8x32xf32>
    %58 = arith.addf %56, %57 : vector<8x32xf32>
    %59 = math.tanh %58 : vector<8x32xf32>
    %60 = vector.extract_strided_slice %46 {offsets = [24, 0], sizes = [8, 32], strides = [1, 1]} : vector<64x32xf32> to vector<8x32xf32>
    %cst_27 = arith.constant dense<0.000000e+00> : vector<8x32xf32>
    %61 = tpu.matmul %59, %42, %cst_27 {dimension_numbers = #tpu.dot_dimension_numbers<[1], [0], [0], [1], [0, 0, 1, 1], [], []>} : vector<8x32xf32>, vector<32x32xf32>, vector<8x32xf32> -> vector<8x32xf32>
    %62 = arith.addf %60, %61 : vector<8x32xf32>
    %63 = math.tanh %62 : vector<8x32xf32>
    %64 = vector.extract_strided_slice %46 {offsets = [32, 0], sizes = [8, 32], strides = [1, 1]} : vector<64x32xf32> to vector<8x32xf32>
    %cst_28 = arith.constant dense<0.000000e+00> : vector<8x32xf32>
    %65 = tpu.matmul %63, %42, %cst_28 {dimension_numbers = #tpu.dot_dimension_numbers<[1], [0], [0], [1], [0, 0, 1, 1], [], []>} : vector<8x32xf32>, vector<32x32xf32>, vector<8x32xf32> -> vector<8x32xf32>
    %66 = arith.addf %64, %65 : vector<8x32xf32>
    %67 = math.tanh %66 : vector<8x32xf32>
    %68 = vector.extract_strided_slice %46 {offsets = [40, 0], sizes = [8, 32], strides = [1, 1]} : vector<64x32xf32> to vector<8x32xf32>
    %cst_29 = arith.constant dense<0.000000e+00> : vector<8x32xf32>
    %69 = tpu.matmul %67, %42, %cst_29 {dimension_numbers = #tpu.dot_dimension_numbers<[1], [0], [0], [1], [0, 0, 1, 1], [], []>} : vector<8x32xf32>, vector<32x32xf32>, vector<8x32xf32> -> vector<8x32xf32>
    %70 = arith.addf %68, %69 : vector<8x32xf32>
    %71 = math.tanh %70 : vector<8x32xf32>
    %72 = vector.extract_strided_slice %46 {offsets = [48, 0], sizes = [8, 32], strides = [1, 1]} : vector<64x32xf32> to vector<8x32xf32>
    %cst_30 = arith.constant dense<0.000000e+00> : vector<8x32xf32>
    %73 = tpu.matmul %71, %42, %cst_30 {dimension_numbers = #tpu.dot_dimension_numbers<[1], [0], [0], [1], [0, 0, 1, 1], [], []>} : vector<8x32xf32>, vector<32x32xf32>, vector<8x32xf32> -> vector<8x32xf32>
    %74 = arith.addf %72, %73 : vector<8x32xf32>
    %75 = math.tanh %74 : vector<8x32xf32>
    %76 = vector.extract_strided_slice %46 {offsets = [56, 0], sizes = [8, 32], strides = [1, 1]} : vector<64x32xf32> to vector<8x32xf32>
    %cst_31 = arith.constant dense<0.000000e+00> : vector<8x32xf32>
    %77 = tpu.matmul %75, %42, %cst_31 {dimension_numbers = #tpu.dot_dimension_numbers<[1], [0], [0], [1], [0, 0, 1, 1], [], []>} : vector<8x32xf32>, vector<32x32xf32>, vector<8x32xf32> -> vector<8x32xf32>
    %78 = arith.addf %76, %77 : vector<8x32xf32>
    %79 = math.tanh %78 : vector<8x32xf32>
    %80 = tpu.concatenate %51, %55, %59, %63, %67, %71, %75, %79 in 0 : vector<8x32xf32>, vector<8x32xf32>, vector<8x32xf32>, vector<8x32xf32>, vector<8x32xf32>, vector<8x32xf32>, vector<8x32xf32>, vector<8x32xf32> -> vector<64x32xf32>
    %c0_32 = arith.constant 0 : index
    %c0_33 = arith.constant 0 : index
    %81 = vector.load %arg7[%c0_32, %c0_33] : memref<32x128xf32, #tpu.memory_space<vmem>>, vector<32x128xf32>
    %cst_34 = arith.constant dense<0.000000e+00> : vector<64x128xf32>
    %82 = tpu.matmul %80, %81, %cst_34 {dimension_numbers = #tpu.dot_dimension_numbers<[1], [0], [0], [1], [0, 0, 1, 1], [], []>} : vector<64x32xf32>, vector<32x128xf32>, vector<64x128xf32> -> vector<64x128xf32>
    %c0_35 = arith.constant 0 : index
    %c0_36 = arith.constant 0 : index
    %83 = vector.load %arg8[%c0_35, %c0_36] : memref<1x128xf32, #tpu.memory_space<vmem>>, vector<1x128xf32>
    %84 = vector.broadcast %83 : vector<1x128xf32> to vector<64x128xf32>
    %85 = arith.addf %82, %84 : vector<64x128xf32>
    %c0_37 = arith.constant 0 : index
    %c0_38 = arith.constant 0 : index
    %86 = vector.load %arg9[%c0_37, %c0_38] : memref<64x128xf32, #tpu.memory_space<vmem>>, vector<64x128xf32>
    tpu.vector_store %arg9[%c0_37, %c0_38], %85 {strides = array<i32>} : memref<64x128xf32, #tpu.memory_space<vmem>>, vector<64x128xf32>,
    return
  }
}

</mosaic_0001>

<bundles_post_ra>
// kernel: stock_forward_pallas.1
= control target key start
LH: loop header
LB: loop body
LE: loop exit
PB: predicated region body
PF: predicated region fallthrough
CT: control target
= control target key end

     0   :  { %vm74_vm0 = vcmask 1043456   ;;  %vm49_vm1 = vcmask 31744   ;;  %v720_v6 = vmov 0.0   ;;  %vm119_vm2 = vcmask 261120   ;;  %s1009_s2 = inlined_call_operand.vmem [shape: f32[32,32], index: 2, kind: input, shape index: {}]   ;;  %s1010_s1 = inlined_call_operand.vmem [shape: f32[4,32], index: 1, kind: input, shape index: {}]   ;;  %s1011_s0 = inlined_call_operand.vmem [shape: f32[64,4], index: 0, kind: input, shape index: {}]   ;;  %s1012_s3 = inlined_call_operand.vmem [shape: f32[1,32], index: 3, kind: input, shape index: {}]   ;;  %s1013_s4 = inlined_call_operand.vmem [shape: f32[32,32], index: 4, kind: input, shape index: {}]   ;;  %s1014_s6 = inlined_call_operand.vmem [shape: f32[1,32], index: 6, kind: input, shape index: {}]   ;;  %s1015_s5 = inlined_call_operand.vmem [shape: f32[32,32], index: 5, kind: input, shape index: {}]   ;;  %s1016_s7 = inlined_call_operand.vmem [shape: f32[32,128], index: 7, kind: input, shape index: {}]   ;;  %s1017_s8 = inlined_call_operand.vmem [shape: f32[1,128], index: 8, kind: input, shape index: {}]   ;;  %s1018_s9 = inlined_call_operand.vmem [shape: f32[64,128], index: 9, kind: output, shape index: {}]  }
   0x1   :  { %v44_v0 = vld [vmem:[%s1009_s2 + $0x18] sm:$0xff]  ;;  %v43_v1 = vld [vmem:[%s1009_s2 + $0x10] sm:$0xff]  ;;  %v40_v2 = vld [vmem:[%s1010_s1] sm:$0xf] }
   0x2   :  { %135 = vmatpush.msra.mxu1 %v44_v0  ;;  %637 = vmatpush.msk.msra.mxu0 %vm74_vm0, %v40_v2  ;;  %v32_v3 = vld [vmem:[%s1011_s0] sm:$0xff]  ;;  %v42_v4 = vld [vmem:[%s1009_s2 + $0x8] sm:$0xff]  ;;  %v34_v14 = vld [vmem:[%s1011_s0 + $0x10] sm:$0xff] }
   0x3   :  { %638 = vmatmul.msk.f32.vlgmr.msra.gmra.mxu0 %vm49_vm1, %v32_v3  ;;  %160 = vmatpush.msra.mxu2 %v44_v0  ;;  %v41_v5 = vld [vmem:[%s1009_s2] sm:$0xff]  ;;  %v33_v7 = vld [vmem:[%s1011_s0 + $0x8] sm:$0xff]  ;;  %v35_v20 = vld [vmem:[%s1011_s0 + $0x18] sm:$0xff] }
   0x4   :  { %136 = vmatpush.msra.mxu1 %v43_v1  ;;  %185 = vmatpush.msra.mxu3 %v44_v0  ;;  %v798_v8 = vld [vmem:[%s1012_s3] ss:$0 sm:$0xff]  ;;  %v323_v32 = vld [vmem:[%s1013_s4 + $0x18] sm:$0xff]  ;;  %v322_v33 = vld [vmem:[%s1013_s4 + $0x10] sm:$0xff] }
   0x5   :  { %161 = vmatpush.msra.mxu2 %v43_v1  ;;  %v36_v26 = vld [vmem:[%s1011_s0 + $0x20] sm:$0xff]  ;;  %v37_v34 = vld [vmem:[%s1011_s0 + $0x28] sm:$0xff]  ;;  %v38_v42 = vld [vmem:[%s1011_s0 + $0x30] sm:$0xff] }
   0x6   :  { %137 = vmatpush.msra.mxu1 %v42_v4  ;;  %186 = vmatpush.msra.mxu3 %v43_v1  ;;  %v321_v35 = vld [vmem:[%s1013_s4 + $0x8] sm:$0xff]  ;;  %v320_v36 = vld [vmem:[%s1013_s4] sm:$0xff]  ;;  %v850_v43 = vld [vmem:[%s1015_s5 + $0x18] sm:$0xff] }
   0x7   :  { %162 = vmatpush.msra.mxu2 %v42_v4  ;;  %v855_v44 = vld [vmem:[%s1015_s5 + $0x10] sm:$0xff]  ;;  %v862_v45 = vld [vmem:[%s1015_s5 + $0x8] sm:$0xff]  ;;  %v871_v46 = vld [vmem:[%s1015_s5] sm:$0xff] }
   0x8   :  { %138 = vmatpush.msra.mxu1 %v41_v5  ;;  %187 = vmatpush.msra.mxu3 %v42_v4  ;;  %v39_v52 = vld [vmem:[%s1011_s0 + $0x38] sm:$0xff]  ;;  %v900_v54 = vld [vmem:[%s1016_s7 + $0x10] sm:$0xff]  ;;  %v905_v55 = vld [vmem:[%s1016_s7 + $0x8] sm:$0xff] }
   0x9   :  { %139 = vmatmul.f32.vlgmr.msra.gmra.mxu1 %v720_v6  ;;  %163 = vmatpush.msra.mxu2 %v41_v5  ;;  %v894_v53 = vld [vmem:[%s1016_s7 + $0x18] sm:$0xff]  ;;  %v911_v56 = vld [vmem:[%s1016_s7] sm:$0xff] }
   0xa   :  { %188 = vmatpush.msra.mxu3 %v41_v5  ;;  %210 = vmatpush.msrb.mxu1 %v44_v0  ;;  %v919_v61 = vld [vmem:[%s1014_s6] ss:$0 sm:$0xff] }
   0xb   :  { %235 = vmatpush.msrb.mxu2 %v44_v0  ;;  %639 = vmatmul.msk.f32.gmra.mxu0 %vm49_vm1, %v33_v7 }
   0xc   :  { %260 = vmatpush.msrb.mxu3 %v44_v0  ;;  %211 = vmatpush.msrb.mxu1 %v43_v1 }
   0xd   :  { %236 = vmatpush.msrb.mxu2 %v43_v1  ;;  %596 = vmatpush.msrb.mxu0 %v894_v53 }
   0xe   :  { %261 = vmatpush.msrb.mxu3 %v43_v1  ;;  %212 = vmatpush.msrb.mxu1 %v42_v4 }
   0xf   :  { %237 = vmatpush.msrb.mxu2 %v42_v4  ;;  %597 = vmatpush.msrb.mxu0 %v900_v54 }
  0x10   :  { %262 = vmatpush.msrb.mxu3 %v42_v4  ;;  %213 = vmatpush.msrb.mxu1 %v41_v5 }
  0x11   :  { %238 = vmatpush.msrb.mxu2 %v41_v5  ;;  %598 = vmatpush.msrb.mxu0 %v905_v55 }
  0x12   :  { %263 = vmatpush.msrb.mxu3 %v41_v5  ;;  %285 = vmatpush.msra.mxu1 %v44_v0 }
  0x13   :  { %640 = vmatmul.msk.f32.gmra.mxu0 %vm49_vm1, %v34_v14 }
  0x14   :  { %286 = vmatpush.msra.mxu1 %v43_v1  ;;  %599 = vmatpush.msrb.mxu0 %v911_v56 }
  0x16   :  { %287 = vmatpush.msra.mxu1 %v42_v4 }
  0x18   :  { %288 = vmatpush.msra.mxu1 %v41_v5 }
  0x1b   :  { %641 = vmatmul.msk.f32.gmra.mxu0 %vm49_vm1, %v35_v20 }
  0x23   :  { %642 = vmatmul.msk.f32.gmra.mxu0 %vm49_vm1, %v36_v26 }
  0x2b   :  { %643 = vmatmul.msk.f32.gmra.mxu0 %vm49_vm1, %v37_v34 }
  0x33   :  { %644 = vmatmul.msk.f32.gmra.mxu0 %vm49_vm1, %v38_v42 }
  0x3b   :  { %645 = vmatmul.msk.f32.gmra.mxu0 %vm49_vm1, %v39_v52 }
  0x80   :  { %v95_v9 = vpop.f32.mrf.mxu0 }
  0x81   :  { %v96_v10 = vadd.f32 %v798_v8, %v95_v9 }
  0x86   :  { %v140_v11 = vpop.f32.mrf.mxu1 }
  0x87   :  { %v143_v12 = vadd.f32 %v140_v11, %v96_v10 }
  0x88   :  { %v98_v15 = vpop.f32.mrf.mxu0 }
  0x89   :  { %688 = vtanh.f32 %v143_v12  ;;  %v99_v16 = vadd.f32 %v798_v8, %v98_v15 }
  0x8f   :  { %v689_v13 = vpop.eup %688 }
  0x90   :  { %646 = vmatmul.msk.f32.vlgmr.msra.gmra.mxu2 %vm119_vm2, %v689_v13  ;;  %v101_v21 = vpop.f32.mrf.mxu0 }
  0x91   :  { %310 = vmatpush.msra.mxu2 %v44_v0  ;;  %v102_v22 = vadd.f32 %v798_v8, %v101_v21 }
  0x93   :  { %311 = vmatpush.msra.mxu2 %v43_v1 }
  0x95   :  { %312 = vmatpush.msra.mxu2 %v42_v4 }
  0x97   :  { %313 = vmatpush.msra.mxu2 %v41_v5 }
  0x98   :  { %v104_v27 = vpop.f32.mrf.mxu0 }
  0x99   :  { %v105_v28 = vadd.f32 %v798_v8, %v104_v27 }
  0xa0   :  { %v107_v37 = vpop.f32.mrf.mxu0 }
  0xa1   :  { %v108_v38 = vadd.f32 %v798_v8, %v107_v37 }
  0xa8   :  { %v110_v47 = vpop.f32.mrf.mxu0 }
  0xa9   :  { %v111_v48 = vadd.f32 %v798_v8, %v110_v47 }
  0xb0   :  { %v113_v57 = vpop.f32.mrf.mxu0 }
  0xb1   :  { %v114_v58 = vadd.f32 %v798_v8, %v113_v57 }
  0xb8   :  { %v116_v4 = vpop.f32.mrf.mxu0 }
  0xb9   :  { %v117_v5 = vadd.f32 %v798_v8, %v116_v4 }
 0x113   :  { %v165_v17 = vpop.f32.mrf.mxu2 }
 0x114   :  { %v168_v18 = vadd.f32 %v165_v17, %v99_v16 }
 0x116   :  { %690 = vtanh.f32 %v168_v18 }
 0x11c   :  { %v691_v19 = vpop.eup %690 }
 0x11d   :  { %647 = vmatmul.msk.f32.vlgmr.msra.gmra.mxu3 %vm119_vm2, %v691_v19 }
 0x11e   :  { %347 = vmatpush.msra.mxu3 %v323_v32 }
 0x120   :  { %348 = vmatpush.msra.mxu3 %v322_v33 }
 0x122   :  { %349 = vmatpush.msra.mxu3 %v321_v35 }
 0x124   :  { %350 = vmatpush.msra.mxu3 %v320_v36 }
 0x1a0   :  { %v190_v23 = vpop.f32.mrf.mxu3 }
 0x1a1   :  { %v193_v24 = vadd.f32 %v190_v23, %v102_v22 }
 0x1a3   :  { %692 = vtanh.f32 %v193_v24 }
 0x1a9   :  { %v693_v25 = vpop.eup %692 }
 0x1aa   :  { %648 = vmatmul.msk.f32.vlgmr.msrb.gmra.mxu1 %vm119_vm2, %v693_v25 }
 0x1ab   :  { %388 = vmatpush.msrb.mxu1 %v850_v43 }
 0x1ad   :  { %389 = vmatpush.msrb.mxu1 %v855_v44 }
 0x1af   :  { %390 = vmatpush.msrb.mxu1 %v862_v45 }
 0x1b1   :  { %391 = vmatpush.msrb.mxu1 %v871_v46 }
 0x227   :  { %v215_v29 = vpop.f32.mrf.mxu1 }
 0x228   :  { %v218_v30 = vadd.f32 %v215_v29, %v105_v28 }
 0x22a   :  { %694 = vtanh.f32 %v218_v30 }
 0x230   :  { %v695_v31 = vpop.eup %694 }
 0x231   :  { %649 = vmatmul.msk.f32.vlgmr.msrb.gmra.mxu2 %vm119_vm2, %v695_v31 }
 0x232   :  { %413 = vmatpush.msrb.mxu2 %v850_v43 }
 0x234   :  { %414 = vmatpush.msrb.mxu2 %v855_v44 }
 0x236   :  { %415 = vmatpush.msrb.mxu2 %v862_v45 }
 0x238   :  { %416 = vmatpush.msrb.mxu2 %v871_v46 }
 0x2b4   :  { %v240_v39 = vpop.f32.mrf.mxu2 }
 0x2b5   :  { %v243_v40 = vadd.f32 %v240_v39, %v108_v38 }
 0x2b7   :  { %696 = vtanh.f32 %v243_v40 }
 0x2bd   :  { %v697_v41 = vpop.eup %696 }
 0x2be   :  { %650 = vmatmul.msk.f32.vlgmr.msrb.gmra.mxu3 %vm119_vm2, %v697_v41 }
 0x2c6   :  { %653 = vmatmul.msk.f32.vlgmr.msra.gmra.mxu3 %vm119_vm2, %v689_v13 }
 0x2ce   :  { %654 = vmatmul.msk.f32.gmra.mxu3 %vm119_vm2, %v691_v19 }
 0x2d6   :  { %655 = vmatmul.msk.f32.gmra.mxu3 %vm119_vm2, %v693_v25 }
 0x2de   :  { %656 = vmatmul.msk.f32.gmra.mxu3 %vm119_vm2, %v695_v31 }
 0x2e6   :  { %657 = vmatmul.msk.f32.gmra.mxu3 %vm119_vm2, %v697_v41 }
 0x341   :  { %v265_v49 = vpop.f32.mrf.mxu3 }
 0x342   :  { %v268_v50 = vadd.f32 %v265_v49, %v111_v48 }
 0x344   :  { %698 = vtanh.f32 %v268_v50 }
 0x349   :  { %v352_v62 = vpop.f32.mrf.mxu3 }
 0x34a   :  { %v699_v51 = vpop.eup %698  ;;  %v353_v63 = vadd.f32 %v919_v61, %v352_v62 }
 0x34b   :  { %651 = vmatmul.msk.f32.vlgmr.msra.gmra.mxu1 %vm119_vm2, %v699_v51  ;;  %658 = vmatmul.msk.f32.gmra.mxu3 %vm119_vm2, %v699_v51 }
 0x34c   :  { %438 = vmatpush.msra.mxu1 %v850_v43 }
 0x34e   :  { %439 = vmatpush.msra.mxu1 %v855_v44 }
 0x350   :  { %440 = vmatpush.msra.mxu1 %v862_v45 }
 0x351   :  { %v355_v12 = vpop.f32.mrf.mxu3 }
 0x352   :  { %441 = vmatpush.msra.mxu1 %v871_v46  ;;  %v356_v13 = vadd.f32 %v919_v61, %v355_v12 }
 0x353   :  { %392 = vmatmul.f32.vlgmr.msrb.gmra.mxu1 %v720_v6  ;;  %v938_v6 = vld [vmem:[%s1017_s8] ss:$0 sm:$0xff] }
 0x354   :  { %488 = vmatpush.msrb.mxu1 %v850_v43 }
 0x356   :  { %489 = vmatpush.msrb.mxu1 %v855_v44 }
 0x358   :  { %490 = vmatpush.msrb.mxu1 %v862_v45 }
 0x359   :  { %v358_v17 = vpop.f32.mrf.mxu3 }
 0x35a   :  { %491 = vmatpush.msrb.mxu1 %v871_v46  ;;  %v359_v18 = vadd.f32 %v919_v61, %v358_v17 }
 0x361   :  { %v361_v24 = vpop.f32.mrf.mxu3 }
 0x362   :  { %v362_v25 = vadd.f32 %v919_v61, %v361_v24 }
 0x369   :  { %v364_v29 = vpop.f32.mrf.mxu3 }
 0x36a   :  { %v365_v30 = vadd.f32 %v919_v61, %v364_v29 }
 0x3c8   :  { %v290_v59 = vpop.f32.mrf.mxu1 }
 0x3c9   :  { %v293_v60 = vadd.f32 %v290_v59, %v114_v58 }
 0x3cb   :  { %700 = vtanh.f32 %v293_v60 }
 0x3ce   :  { %v367_v34 = vpop.f32.mrf.mxu3 }
 0x3cf   :  { %v368_v35 = vadd.f32 %v919_v61, %v367_v34 }
 0x3d0   :  { %v393_v0 = vpop.f32.mrf.mxu1 }
 0x3d1   :  { %v701_v1 = vpop.eup %700  ;;  %v396_v2 = vadd.f32 %v393_v0, %v353_v63 }
 0x3d2   :  { %652 = vmatmul.msk.f32.vlgmr.msra.gmra.mxu2 %vm119_vm2, %v701_v1  ;;  %659 = vmatmul.msk.f32.gmra.mxu3 %vm119_vm2, %v701_v1 }
 0x3d3   :  { %702 = vtanh.f32 %v396_v2  ;;  %463 = vmatpush.msra.mxu2 %v850_v43 }
 0x3d5   :  { %464 = vmatpush.msra.mxu2 %v855_v44 }
 0x3d7   :  { %465 = vmatpush.msra.mxu2 %v862_v45 }
 0x3d9   :  { %v703_v3 = vpop.eup %702  ;;  %466 = vmatpush.msra.mxu2 %v871_v46 }
 0x3da   :  { %661 = vmatmul.msk.f32.vlgmr.msrb.gmra.mxu2 %vm119_vm2, %v703_v3  ;;  %668 = vmatmul.msk.f32.vlgmr.msrb.gmra.mxu0 %vm119_vm2, %v703_v3 }
 0x3db   :  { %513 = vmatpush.msrb.mxu2 %v850_v43 }
 0x3dd   :  { %514 = vmatpush.msrb.mxu2 %v855_v44 }
 0x3df   :  { %515 = vmatpush.msrb.mxu2 %v862_v45 }
 0x3e1   :  { %516 = vmatpush.msrb.mxu2 %v871_v46 }
 0x455   :  { %v315_v7 = vpop.f32.mrf.mxu2  ;;  %v370_v39 = vpop.f32.mrf.mxu3 }
 0x456   :  { %v318_v9 = vadd.f32 %v315_v7, %v117_v5  ;;  %v371_v40 = vadd.f32 %v919_v61, %v370_v39 }
 0x457   :  { %v601_v10 = vpop.f32.mrf.mxu0 }
 0x458   :  { %704 = vtanh.f32 %v318_v9  ;;  %v602_v11 = vadd.f32 %v938_v6, %v601_v10 }
 0x45a   :  { %625 = vst [vmem:[%s1018_s9] sm:$0xff] %v602_v11 }
 0x45d   :  { %v418_v14 = vpop.f32.mrf.mxu2 }
 0x45e   :  { %v705_v8 = vpop.eup %704  ;;  %v421_v15 = vadd.f32 %v418_v14, %v356_v13 }
 0x45f   :  { %660 = vmatmul.msk.f32.gmra.mxu3 %vm119_vm2, %v705_v8 }
 0x460   :  { %706 = vtanh.f32 %v421_v15 }
 0x466   :  { %v707_v16 = vpop.eup %706 }
 0x467   :  { %662 = vmatmul.msk.f32.vlgmr.msra.gmra.mxu1 %vm119_vm2, %v707_v16  ;;  %669 = vmatmul.msk.f32.gmra.mxu0 %vm119_vm2, %v707_v16 }
 0x468   :  { %538 = vmatpush.msra.mxu1 %v850_v43 }
 0x46a   :  { %539 = vmatpush.msra.mxu1 %v855_v44 }
 0x46c   :  { %540 = vmatpush.msra.mxu1 %v862_v45 }
 0x46e   :  { %541 = vmatpush.msra.mxu1 %v871_v46 }
 0x4e2   :  { %v373_v50 = vpop.f32.mrf.mxu3 }
 0x4e3   :  { %v374_v51 = vadd.f32 %v919_v61, %v373_v50 }
 0x4e4   :  { %v443_v19 = vpop.f32.mrf.mxu1  ;;  %v604_v20 = vpop.f32.mrf.mxu0 }
 0x4e5   :  { %v446_v21 = vadd.f32 %v443_v19, %v359_v18  ;;  %v605_v22 = vadd.f32 %v938_v6, %v604_v20 }
 0x4e7   :  { %708 = vtanh.f32 %v446_v21  ;;  %626 = vst [vmem:[%s1018_s9 + $0x8] sm:$0xff] %v605_v22 }
 0x4ed   :  { %v709_v23 = vpop.eup %708 }
 0x4ee   :  { %663 = vmatmul.msk.f32.vlgmr.msra.gmra.mxu2 %vm119_vm2, %v709_v23 }
 0x4ef   :  { %563 = vmatpush.msra.mxu2 %v850_v43 }
 0x4f1   :  { %564 = vmatpush.msra.mxu2 %v855_v44 }
 0x4f3   :  { %565 = vmatpush.msra.mxu2 %v862_v45 }
 0x4f5   :  { %566 = vmatpush.msra.mxu2 %v871_v46 }
 0x571   :  { %v468_v26 = vpop.f32.mrf.mxu2 }
 0x572   :  { %v471_v27 = vadd.f32 %v468_v26, %v362_v25 }
 0x574   :  { %710 = vtanh.f32 %v471_v27 }
 0x57a   :  { %v711_v28 = vpop.eup %710 }
 0x57b   :  { %664 = vmatmul.msk.f32.vlgmr.msrb.gmra.mxu1 %vm119_vm2, %v711_v28 }
 0x57c   :  { %676 = vmatpush.msrb.mxu1 %v894_v53 }
 0x57e   :  { %678 = vmatpush.msrb.mxu1 %v900_v54 }
 0x580   :  { %680 = vmatpush.msrb.mxu1 %v905_v55 }
 0x582   :  { %682 = vmatpush.msrb.mxu1 %v911_v56 }
 0x5f8   :  { %v493_v31 = vpop.f32.mrf.mxu1 }
 0x5f9   :  { %v496_v32 = vadd.f32 %v493_v31, %v365_v30 }
 0x5fb   :  { %712 = vtanh.f32 %v496_v32 }
 0x601   :  { %v713_v33 = vpop.eup %712 }
 0x602   :  { %665 = vmatmul.msk.f32.vlgmr.msrb.gmra.mxu2 %vm119_vm2, %v713_v33 }
 0x603   :  { %677 = vmatpush.msrb.mxu2 %v894_v53 }
 0x605   :  { %679 = vmatpush.msrb.mxu2 %v900_v54 }
 0x607   :  { %681 = vmatpush.msrb.mxu2 %v905_v55 }
 0x609   :  { %683 = vmatpush.msrb.mxu2 %v911_v56 }
 0x685   :  { %v518_v36 = vpop.f32.mrf.mxu2 }
 0x686   :  { %v521_v37 = vadd.f32 %v518_v36, %v368_v35 }
 0x688   :  { %714 = vtanh.f32 %v521_v37 }
 0x68e   :  { %v715_v38 = vpop.eup %714 }
 0x68f   :  { %666 = vmatmul.msk.f32.vlgmr.msra.gmra.mxu1 %vm119_vm2, %v715_v38 }
 0x697   :  { %670 = vmatmul.msk.f32.vlgmr.msrb.gmra.mxu1 %vm119_vm2, %v709_v23 }
 0x69f   :  { %671 = vmatmul.msk.f32.gmra.mxu1 %vm119_vm2, %v711_v28 }
 0x6a7   :  { %672 = vmatmul.msk.f32.gmra.mxu1 %vm119_vm2, %v713_v33 }
 0x70c   :  { %v543_v41 = vpop.f32.mrf.mxu1 }
 0x70d   :  { %v546_v42 = vadd.f32 %v543_v41, %v371_v40 }
 0x70f   :  { %716 = vtanh.f32 %v546_v42 }
 0x714   :  { %v607_v43 = vpop.f32.mrf.mxu1 }
 0x715   :  { %v717_v44 = vpop.eup %716  ;;  %v608_v45 = vadd.f32 %v938_v6, %v607_v43 }
 0x716   :  { %667 = vmatmul.msk.f32.vlgmr.msra.gmra.mxu2 %vm119_vm2, %v717_v44 }
 0x717   :  { %627 = vst [vmem:[%s1018_s9 + $0x10] sm:$0xff] %v608_v45 }
 0x71c   :  { %v610_v46 = vpop.f32.mrf.mxu1 }
 0x71d   :  { %v611_v47 = vadd.f32 %v938_v6, %v610_v46 }
 0x71e   :  { %673 = vmatmul.msk.f32.vlgmr.msrb.gmra.mxu2 %vm119_vm2, %v715_v38 }
 0x71f   :  { %628 = vst [vmem:[%s1018_s9 + $0x18] sm:$0xff] %v611_v47 }
 0x724   :  { %v613_v48 = vpop.f32.mrf.mxu1 }
 0x725   :  { %v614_v49 = vadd.f32 %v938_v6, %v613_v48 }
 0x726   :  { %674 = vmatmul.msk.f32.gmra.mxu2 %vm119_vm2, %v717_v44 }
 0x727   :  { %629 = vst [vmem:[%s1018_s9 + $0x20] sm:$0xff] %v614_v49 }
 0x799   :  { %v568_v52 = vpop.f32.mrf.mxu2 }
 0x79a   :  { %v571_v53 = vadd.f32 %v568_v52, %v374_v51 }
 0x79c   :  { %718 = vtanh.f32 %v571_v53 }
 0x7a1   :  { %v616_v54 = vpop.f32.mrf.mxu2 }
 0x7a2   :  { %v719_v55 = vpop.eup %718  ;;  %v617_v56 = vadd.f32 %v938_v6, %v616_v54 }
 0x7a3   :  { %675 = vmatmul.msk.f32.gmra.mxu2 %vm119_vm2, %v719_v55 }
 0x7a4   :  { %630 = vst [vmem:[%s1018_s9 + $0x28] sm:$0xff] %v617_v56 }
 0x7a9   :  { %v619_v57 = vpop.f32.mrf.mxu2 }
 0x7aa   :  { %v620_v58 = vadd.f32 %v938_v6, %v619_v57 }
 0x7ac   :  { %631 = vst [vmem:[%s1018_s9 + $0x30] sm:$0xff] %v620_v58 }
 0x826   :  { %v622_v59 = vpop.f32.mrf.mxu2 }
 0x827   :  { %v623_v60 = vadd.f32 %v938_v6, %v622_v59 }
 0x829   :  { %632 = vst [vmem:[%s1018_s9 + $0x38] sm:$0xff] %v623_v60 }

</bundles_post_ra>
